<compile_context>
chip_gen: v7x
topology: tpu7x:2x2x1
jax: 0.10.0
libtpu: 0.0.40
codegen_flags: <defaults>
</compile_context>

<pallas_src>
import math

import jax
import jax.numpy as jnp
from jax.experimental import pallas as pl
from jax.experimental.pallas import tpu as pltpu


def _mae_kernel(x_ref, y_ref, o_ref):
    # In-kernel dtype promotion: read the operands in their original (possibly
    # narrower) dtypes and cast on the VPU — the kernel is DMA-bound, so the
    # cast is free and we save a whole HBM pass vs. a wrapper astype.
    dt = o_ref.dtype
    o_ref[...] = jnp.abs(x_ref[...].astype(dt) - y_ref[...].astype(dt))


def mae_loss(inputs, targets, *, target_step_bytes=12 * 1024 * 1024,
             min_pallas_elems=1 << 20):
    """Computes |inputs - targets| elementwise, matching torch's
    (inputs - targets).abs(): broadcasting, promoted dtype, no reduction.

    target_step_bytes: combined x+y+out bytes moved per grid step (~12 MiB ->
      ~4 MiB output blocks for f32, ~24 MiB resident double-buffered).
    min_pallas_elems: tensors smaller than this go to the fused-XLA path
      (pallas_call fixed overhead dominates for sub-MiB tensors).
    """
    out_shape = jnp.broadcast_shapes(inputs.shape, targets.shape)
    out_dtype = jnp.result_type(inputs.dtype, targets.dtype)
    n = math.prod(out_shape) if out_shape else 1

    def _fallback():
        # Plain fused XLA elementwise: already at the HBM roofline, no
        # materialized temporaries (broadcast/cast fuse into the abs(sub)).
        return jnp.abs(inputs.astype(out_dtype) - targets.astype(out_dtype))

    if (n == 0 or n < min_pallas_elems
            or inputs.shape != targets.shape      # broadcasting case
            or len(out_shape) < 2):               # 1-D / 0-D: no safe 2-D view
        return _fallback()

    isz_x = inputs.dtype.itemsize
    isz_y = targets.dtype.itemsize
    isz_o = jnp.dtype(out_dtype).itemsize
    sum_isz = isz_x + isz_y + isz_o
    # Sublane multiple covering the most tightly packed dtype involved
    # (8 for 32-bit, 16 for bf16, 32 for int8).
    sub_m = 8 * max(1, 4 // min(isz_x, isz_y, isz_o))

    cols = out_shape[-1]           # keep the native minor dim (lane axis)
    rows = n // cols

    # Collapsing leading dims is only a layout-preserving bitcast when the
    # second-minor dim is already sublane-tile aligned; otherwise XLA would
    # relayout both inputs and the output (extra full HBM passes), so the
    # fused-XLA path is faster.
    if len(out_shape) > 2 and out_shape[-2] % sub_m != 0:
        return _fallback()

    # Byte-based row tiling: block = (tr, cols), ~target_step_bytes of total
    # traffic per grid step.  Ragged last block handled by Pallas masking.
    row_bytes = cols * sum_isz
    tr = max(sub_m, (target_step_bytes // max(row_bytes, 1)) // sub_m * sub_m)
    if tr >= rows:
        tr = rows                   # full-dim block: always legal
    # Guard: even a minimal double-buffered working set must fit in VMEM
    # (protects against enormous last dims).
    if tr * row_bytes * 2 > 40 * 1024 * 1024:
        return _fallback()

    x2 = inputs.reshape(rows, cols)     # layout-preserving (leading dims only)
    y2 = targets.reshape(rows, cols)

    grid = (pl.cdiv(rows, tr),)
    cost = pl.CostEstimate(
        flops=n,
        transcendentals=0,
        bytes_accessed=n * sum_isz,
    )

    out2 = pl.pallas_call(
        _mae_kernel,
        out_shape=jax.ShapeDtypeStruct((rows, cols), out_dtype),
        grid_spec=pltpu.PrefetchScalarGridSpec(
            num_scalar_prefetch=0,
            grid=grid,
            in_specs=[
                pl.BlockSpec((tr, cols), lambda i: (i, 0)),
                pl.BlockSpec((tr, cols), lambda i: (i, 0)),
            ],
            out_specs=pl.BlockSpec((tr, cols), lambda i: (i, 0)),
        ),
        compiler_params=pltpu.CompilerParams(
            # Single streaming axis; "parallel" lets megacore/v7x shard the
            # row blocks across TensorCores.
            dimension_semantics=("parallel",),
            # ~24 MiB resident (3 streams x 2 buffers); 48 MiB limit leaves
            # headroom and stays inside v7x's 64 MiB physical VMEM.
            vmem_limit_bytes=48 * 1024 * 1024,
        ),
        cost_estimate=cost,
    )(x2, y2)

    return out2.reshape(out_shape)      # inverse of the bitcast collapse


if __name__ == "__main__":
    key = jax.random.PRNGKey(0)
    k1, k2 = jax.random.split(key)
    # Small NCHW-shaped example inputs (MAELoss has no parameters).
    shape = (2, 4, 16, 16)
    inputs = jax.random.normal(k1, shape, dtype=jnp.float32)
    targets = jax.random.normal(k2, shape, dtype=jnp.float32)
    ref = jnp.abs(inputs - targets)

    # 1) Pallas path (forced for this small demo shape), single-block grid.
    out = jax.block_until_ready(mae_loss(inputs, targets, min_pallas_elems=0))
    assert out.shape == shape and out.dtype == ref.dtype
    assert jnp.allclose(out, ref, atol=1e-6, rtol=1e-6)

    # 2) Pallas path with a multi-step grid and a ragged last row block
    #    (tiny per-step byte budget just to exercise the tiling/masking).
    out2 = jax.block_until_ready(
        mae_loss(inputs, targets, min_pallas_elems=0,
                 target_step_bytes=8 * 1024))
    assert jnp.allclose(out2, ref, atol=1e-6, rtol=1e-6)

    # 3) Mixed dtypes: promotion fused into the kernel (no wrapper astype).
    targets_bf16 = targets.astype(jnp.bfloat16)
    out3 = jax.block_until_ready(
        mae_loss(inputs, targets_bf16, min_pallas_elems=0))
    ref3 = jnp.abs(inputs - targets_bf16.astype(jnp.float32))
    assert out3.dtype == jnp.float32
    assert jnp.allclose(out3, ref3, atol=1e-2, rtol=1e-2)

    # 4) Broadcasting / tiny tensors take the fused-XLA fallback path.
    out4 = jax.block_until_ready(mae_loss(inputs, targets[:1]))
    assert jnp.allclose(out4, jnp.abs(inputs - targets[:1]), atol=1e-6)

    print("KERNEL_OK")
</pallas_src>

<mosaic_0001>
module attributes {stable_mosaic.version = 11 : i64} {
  func.func @_mae_kernel(%arg0: i32, %arg1: memref<128x16xf32, #tpu.memory_space<vmem>>, %arg2: memref<128x16xf32, #tpu.memory_space<vmem>>, %arg3: memref<128x16xf32, #tpu.memory_space<vmem>>) attributes {dimension_semantics = [#tpu.dimension_semantics<parallel>], iteration_bounds = array<i64: 1>, scalar_prefetch = 0 : i64, scratch_operands = 0 : i64, tpu.core_type = #tpu.core_type<tc>, window_params = [{transform_indices = @transform_0, window_bounds = array<i64: 128, 16>}, {transform_indices = @transform_1, window_bounds = array<i64: 128, 16>}, {transform_indices = @transform_2, window_bounds = array<i64: 128, 16>}]} {
    %c0 = arith.constant 0 : index
    %c0_0 = arith.constant 0 : index
    %0 = vector.load %arg1[%c0, %c0_0] : memref<128x16xf32, #tpu.memory_space<vmem>>, vector<128x16xf32>
    %c0_1 = arith.constant 0 : index
    %c0_2 = arith.constant 0 : index
    %1 = vector.load %arg2[%c0_1, %c0_2] : memref<128x16xf32, #tpu.memory_space<vmem>>, vector<128x16xf32>
    %2 = arith.subf %0, %1 : vector<128x16xf32>
    %3 = math.absf %2 : vector<128x16xf32>
    %c0_3 = arith.constant 0 : index
    %c0_4 = arith.constant 0 : index
    %4 = vector.load %arg3[%c0_3, %c0_4] : memref<128x16xf32, #tpu.memory_space<vmem>>, vector<128x16xf32>
    tpu.vector_store %arg3[%c0_3, %c0_4], %3 {strides = array<i32>} : memref<128x16xf32, #tpu.memory_space<vmem>>, vector<128x16xf32>,
    return
  }
  func.func @transform_0(%arg0: i32) -> (i32, i32) {
    %c0_i32 = arith.constant 0 : i32
    %c0_i32_0 = arith.constant 0 : i32
    return %arg0, %c0_i32 : i32, i32
  }
  func.func @transform_1(%arg0: i32) -> (i32, i32) {
    %c0_i32 = arith.constant 0 : i32
    %c0_i32_0 = arith.constant 0 : i32
    return %arg0, %c0_i32 : i32, i32
  }
  func.func @transform_2(%arg0: i32) -> (i32, i32) {
    %c0_i32 = arith.constant 0 : i32
    %c0_i32_0 = arith.constant 0 : i32
    return %arg0, %c0_i32 : i32, i32
  }
}

</mosaic_0001>

<bundles_post_ra>
// kernel: tpu_custom_call.1
= control target key start
LH: loop header
LB: loop body
LE: loop exit
PB: predicated region body
PF: predicated region fallthrough
CT: control target
= control target key end

     0   :  { %vm75_vm0 = vcmask 130048   ;;  %s271_s0 = inlined_call_operand.vmem [shape: f32[128,16], index: 0, kind: input, shape index: {}]   ;;  %s272_s1 = inlined_call_operand.vmem [shape: f32[128,16], index: 1, kind: input, shape index: {}]   ;;  %s273_s2 = inlined_call_operand.vmem [shape: f32[128,16], index: 2, kind: output, shape index: {}]  }
   0x1   :  { %v11_v0 = vld [vmem:[%s271_s0] sm:$0xff]  ;;  %v12_v2 = vld [vmem:[%s271_s0 + $0x8] sm:$0xff]  ;;  %v13_v5 = vld [vmem:[%s271_s0 + $0x10] sm:$0xff] }
   0x2   :  { %v27_v1 = vld [vmem:[%s272_s1] sm:$0xff]  ;;  %v28_v4 = vld [vmem:[%s272_s1 + $0x8] sm:$0xff]  ;;  %v29_v6 = vld [vmem:[%s272_s1 + $0x10] sm:$0xff] }
   0x3   :  { %v43_v3 = vsub.f32 %v11_v0, %v27_v1  ;;  %v44_v7 = vsub.f32 %v12_v2, %v28_v4  ;;  %v45_v8 = vsub.f32 %v13_v5, %v29_v6  ;;  %v14_v9 = vld [vmem:[%s271_s0 + $0x18] sm:$0xff]  ;;  %v15_v11 = vld [vmem:[%s271_s0 + $0x20] sm:$0xff]  ;;  %v16_v15 = vld [vmem:[%s271_s0 + $0x28] sm:$0xff] }
   0x4   :  { %v30_v10 = vld [vmem:[%s272_s1 + $0x18] sm:$0xff]  ;;  %v31_v14 = vld [vmem:[%s272_s1 + $0x20] sm:$0xff]  ;;  %v32_v16 = vld [vmem:[%s272_s1 + $0x28] sm:$0xff] }
   0x5   :  { %v59_v12 = vand.u32 2147483647, %v43_v3  ;;  %v46_v13 = vsub.f32 %v14_v9, %v30_v10  ;;  %v60_v17 = vand.u32 2147483647, %v44_v7  ;;  %v61_v18 = vand.u32 2147483647, %v45_v8 }
   0x6   :  { %v47_v19 = vsub.f32 %v15_v11, %v31_v14  ;;  %v48_v20 = vsub.f32 %v16_v15, %v32_v16  ;;  %v17_v21 = vld [vmem:[%s271_s0 + $0x30] sm:$0xff]  ;;  %v18_v25 = vld [vmem:[%s271_s0 + $0x38] sm:$0xff]  ;;  %v19_v27 = vld [vmem:[%s271_s0 + $0x40] sm:$0xff] }
   0x7   :  { %v33_v22 = vld [vmem:[%s272_s1 + $0x30] sm:$0xff]  ;;  %76 = vst.msk [vmem:[%s273_s2] sm:$0xff] %vm75_vm0, %v59_v12  ;;  %v62_v23 = vand.u32 2147483647, %v46_v13  ;;  %v34_v26 = vld [vmem:[%s272_s1 + $0x38] sm:$0xff]  ;;  %77 = vst.msk [vmem:[%s273_s2 + $0x8] sm:$0xff] %vm75_vm0, %v60_v17 }
   0x8   :  { %v49_v24 = vsub.f32 %v17_v21, %v33_v22  ;;  %78 = vst.msk [vmem:[%s273_s2 + $0x10] sm:$0xff] %vm75_vm0, %v61_v18  ;;  %v63_v28 = vand.u32 2147483647, %v47_v19  ;;  %v64_v29 = vand.u32 2147483647, %v48_v20  ;;  %v50_v30 = vsub.f32 %v18_v25, %v34_v26  ;;  %v35_v31 = vld [vmem:[%s272_s1 + $0x40] sm:$0xff] }
   0x9   :  { %v20_v32 = vld [vmem:[%s271_s0 + $0x48] sm:$0xff]  ;;  %79 = vst.msk [vmem:[%s273_s2 + $0x18] sm:$0xff] %vm75_vm0, %v62_v23  ;;  %v51_v34 = vsub.f32 %v19_v27, %v35_v31  ;;  %v21_v36 = vld [vmem:[%s271_s0 + $0x50] sm:$0xff]  ;;  %v22_v41 = vld [vmem:[%s271_s0 + $0x58] sm:$0xff] }
   0xa   :  { %v65_v33 = vand.u32 2147483647, %v49_v24  ;;  %v36_v35 = vld [vmem:[%s272_s1 + $0x48] sm:$0xff]  ;;  %v37_v37 = vld [vmem:[%s272_s1 + $0x50] sm:$0xff]  ;;  %80 = vst.msk [vmem:[%s273_s2 + $0x20] sm:$0xff] %vm75_vm0, %v63_v28  ;;  %81 = vst.msk [vmem:[%s273_s2 + $0x28] sm:$0xff] %vm75_vm0, %v64_v29 }
   0xb   :  { %v66_v38 = vand.u32 2147483647, %v50_v30  ;;  %v52_v39 = vsub.f32 %v20_v32, %v36_v35  ;;  %v53_v40 = vsub.f32 %v21_v36, %v37_v37  ;;  %v38_v42 = vld [vmem:[%s272_s1 + $0x58] sm:$0xff]  ;;  %v23_v43 = vld [vmem:[%s271_s0 + $0x60] sm:$0xff]  ;;  %v67_v44 = vand.u32 2147483647, %v51_v34 }
   0xc   :  { %82 = vst.msk [vmem:[%s273_s2 + $0x30] sm:$0xff] %vm75_vm0, %v65_v33  ;;  %v54_v45 = vsub.f32 %v22_v41, %v38_v42  ;;  %v39_v46 = vld [vmem:[%s272_s1 + $0x60] sm:$0xff]  ;;  %v24_v47 = vld [vmem:[%s271_s0 + $0x68] sm:$0xff]  ;;  %v25_v53 = vld [vmem:[%s271_s0 + $0x70] sm:$0xff] }
   0xd   :  { %v40_v48 = vld [vmem:[%s272_s1 + $0x68] sm:$0xff]  ;;  %83 = vst.msk [vmem:[%s273_s2 + $0x38] sm:$0xff] %vm75_vm0, %v66_v38  ;;  %v68_v49 = vand.u32 2147483647, %v52_v39  ;;  %v69_v50 = vand.u32 2147483647, %v53_v40  ;;  %v55_v51 = vsub.f32 %v23_v43, %v39_v46 }
   0xe   :  { %v56_v52 = vsub.f32 %v24_v47, %v40_v48  ;;  %v41_v54 = vld [vmem:[%s272_s1 + $0x70] sm:$0xff]  ;;  %84 = vst.msk [vmem:[%s273_s2 + $0x40] sm:$0xff] %vm75_vm0, %v67_v44  ;;  %v70_v55 = vand.u32 2147483647, %v54_v45  ;;  %v26_v57 = vld [vmem:[%s271_s0 + $0x78] sm:$0xff] }
   0xf   :  { %v57_v56 = vsub.f32 %v25_v53, %v41_v54  ;;  %v42_v58 = vld [vmem:[%s272_s1 + $0x78] sm:$0xff]  ;;  %85 = vst.msk [vmem:[%s273_s2 + $0x48] sm:$0xff] %vm75_vm0, %v68_v49  ;;  %86 = vst.msk [vmem:[%s273_s2 + $0x50] sm:$0xff] %vm75_vm0, %v69_v50  ;;  %v71_v59 = vand.u32 2147483647, %v55_v51 }
  0x10   :  { %v72_v60 = vand.u32 2147483647, %v56_v52  ;;  %v58_v61 = vsub.f32 %v26_v57, %v42_v58  ;;  %87 = vst.msk [vmem:[%s273_s2 + $0x58] sm:$0xff] %vm75_vm0, %v70_v55 }
  0x11   :  { %v73_v62 = vand.u32 2147483647, %v57_v56  ;;  %88 = vst.msk [vmem:[%s273_s2 + $0x60] sm:$0xff] %vm75_vm0, %v71_v59 }
  0x12   :  { %89 = vst.msk [vmem:[%s273_s2 + $0x68] sm:$0xff] %vm75_vm0, %v72_v60  ;;  %v74_v63 = vand.u32 2147483647, %v58_v61 }
  0x13   :  { %90 = vst.msk [vmem:[%s273_s2 + $0x70] sm:$0xff] %vm75_vm0, %v73_v62 }
  0x14   :  { %91 = vst.msk [vmem:[%s273_s2 + $0x78] sm:$0xff] %vm75_vm0, %v74_v63 }

</bundles_post_ra>
